<compile_context>
chip_gen: v6e
topology: v6e:2x2x1
jax: 0.10.0
libtpu: 0.0.40
codegen_flags: <defaults>
</compile_context>

<pallas_src>
import functools
import math

import jax
import jax.numpy as jnp
from jax.experimental import pallas as pl
from jax.experimental.pallas import tpu as pltpu


_LANE = 128
_ROW_CAP = 128   # cap on packed rows Bt*E: keeps the block-diagonal MXU work hidden


def _round_up(x, m):
    return (x + m - 1) // m * m


def _vmem_capacity_bytes():
    try:
        info = pltpu.get_tpu_info()
        cap = int(getattr(info, "vmem_capacity_bytes", 0) or 0)
    except Exception:
        cap = 0
    return cap or (64 << 20)       # conservative (v7x-sized) default


def _choose_tiling(B, E, P, itemsize, budget):
    """Tiling for the packed (B*E, P) layout.

    Returns (bt, n_b, tile_p, n_p, rows_pad, needs_row_mask).  Bt*E (the row block) is a
    multiple of the sublane tile whenever it is not the full row extent, so DMAs / vregs /
    stores are dense and the VMEM accounting matches reality.
    """
    sublane = max(8, 32 // itemsize)              # 8 rows (f32) / 16 rows (bf16) per vreg
    bt_unit = sublane // math.gcd(E, sublane)     # smallest Bt with (Bt*E) % sublane == 0

    def step_bytes(rows, tp):                     # in + out tile, double-buffered, padded
        return 2 * 2 * _round_up(rows, sublane) * _round_up(tp, _LANE) * itemsize

    # ---- row (batch) block first: dense packing, Bt as large as cap/budget allow -----
    needs_row_mask = False
    if B <= bt_unit:
        bt = B                                    # full-extent rows: always legal
    else:
        bt_cap = max(bt_unit, (_ROW_CAP // E // bt_unit) * bt_unit)
        hi = min(B, bt_cap)
        aligned_div = [d for d in range(bt_unit, hi + 1)
                       if B % d == 0 and (d * E) % sublane == 0
                       and step_bytes(d * E, _LANE) <= budget]
        if aligned_div:
            bt = aligned_div[-1]
        elif B * E <= max(_ROW_CAP, _round_up(E, sublane)):
            bt = B                                # small problem: one full-extent block
        else:
            # No sublane-aligned divisor of B: use an aligned non-divisor block; the
            # kernel masks the garbage tail rows of the last (partial) block.
            cands = [c for c in range(bt_unit, hi + 1, bt_unit)
                     if step_bytes(c * E, _LANE) <= budget]
            bt = cands[-1] if cands else bt_unit
            needs_row_mask = (B % bt != 0)
    # TODO(synk): pathologically large B*E with no aligned divisor (row block > VMEM
    # budget) would need a K-split of the scaling matmul with accumulation.
    rows = bt * E
    rows_pad = _round_up(rows, sublane)
    n_b = pl.cdiv(B, bt)

    # ---- pixel tile: grow to fill the budget; keep stores lane-dense -----------------
    max_tp = max(_LANE, (budget // (2 * 2 * rows_pad * itemsize)) // _LANE * _LANE)
    if P <= max_tp:
        tile_p = P                                # full extent: always legal
    else:
        tile_p = max_tp
        for cand in range(max_tp, _LANE - 1, -_LANE):  # prefer a 128-multiple dividing P
            if P % cand == 0:
                tile_p = cand
                break
    n_p = pl.cdiv(P, tile_p)

    # ---- prefer >= 4 parallel grid steps (v7x has 2 TensorCores) when the per-step ----
    # ---- in+out payload stays >= ~4 MiB (keeps the ~0.35 us/step overhead small) ------
    while n_b * n_p < 4 and tile_p > _LANE:
        half = _round_up(max(_LANE, tile_p // 2), _LANE)
        if half >= tile_p or 2 * rows_pad * half * itemsize < (4 << 20):
            break
        tile_p = half
        n_p = pl.cdiv(P, tile_p)

    return bt, n_b, tile_p, n_p, rows_pad, needs_row_mask


def _scale_kernel(valid_rows, s_ref, x_ref, o_ref):
    """One dense MXU matmul per grid step: (Rt, Rt) block-diag scaling @ (Rt, tile_p)."""
    x = x_ref[...]
    if valid_rows is not None:
        # Last row block may extend past B*E: zero the out-of-bounds rows so garbage
        # NaN/Inf bit patterns cannot leak into valid rows via 0 * NaN in the dot.
        rt = x_ref.shape[0]
        start = pl.program_id(0) * rt
        row = jax.lax.broadcasted_iota(jnp.int32, x.shape, 0) + start
        x = jnp.where(row < valid_rows, x, jnp.zeros_like(x))
    o_ref[...] = jnp.dot(
        s_ref[...], x, preferred_element_type=jnp.float32
    ).astype(o_ref.dtype)


def abundance_scaling(x, scaling_matrix):
    """x: (B, E, H, W); scaling_matrix: (E, E).  out[b] = S @ x[b].reshape(E, H*W)."""
    B, E, H, W = x.shape
    P = H * W
    dtype = x.dtype
    itemsize = jnp.dtype(dtype).itemsize
    sublane = max(8, 32 // itemsize)

    cap = _vmem_capacity_bytes()
    budget = max(8 << 20, min(cap // 4, 32 << 20))   # ~16 MiB on v7x, ~32 MiB on v5e/v6e

    bt, n_b, tile_p, n_p, rows_pad, needs_mask = _choose_tiling(B, E, P, itemsize, budget)
    rt = bt * E

    # Block-diagonal scaling matrix: one copy of S per batch element in the row block.
    # (bf16 inputs run the matmul natively in bf16 with f32 accumulation.)
    big_s = jnp.kron(jnp.eye(bt, dtype=scaling_matrix.dtype), scaling_matrix).astype(dtype)

    x2d = x.reshape(B * E, P)                        # packed rows: (b, e) -> b * E + e

    s_spec = pl.BlockSpec((rt, rt), lambda b, p: (0, 0))       # resident across the grid
    x_spec = pl.BlockSpec((rt, tile_p), lambda b, p: (b, p))
    o_spec = pl.BlockSpec((rt, tile_p), lambda b, p: (b, p))

    # Real (padded) working set; the x2 pipeline double buffering is counted exactly once.
    working = 2 * 2 * rows_pad * _round_up(tile_p, _LANE) * itemsize
    s_bytes = 2 * _round_up(rt, sublane) * _round_up(rt, _LANE) * itemsize
    vmem_limit = max(32 << 20, working + s_bytes + (4 << 20))
    vmem_limit = min(vmem_limit, max(32 << 20, cap - (16 << 20)))

    kernel = functools.partial(_scale_kernel, (B * E) if needs_mask else None)

    out2d = pl.pallas_call(
        kernel,
        out_shape=jax.ShapeDtypeStruct((B * E, P), dtype),
        grid_spec=pltpu.PrefetchScalarGridSpec(
            num_scalar_prefetch=0,
            grid=(n_b, n_p),
            in_specs=[s_spec, x_spec],
            out_specs=o_spec,
        ),
        compiler_params=pltpu.CompilerParams(
            dimension_semantics=("parallel", "parallel"),
            vmem_limit_bytes=int(vmem_limit),
        ),
        cost_estimate=pl.CostEstimate(
            flops=2 * B * E * E * P,
            transcendentals=0,
            bytes_accessed=2 * B * E * P * itemsize + rt * rt * itemsize,
        ),
    )(big_s, x2d)

    return out2d.reshape(B, E, H, W)


if __name__ == "__main__":
    B, E, H, W = 2, 4, 16, 16

    key = jax.random.PRNGKey(0)
    kx, ks = jax.random.split(key)
    x = jax.random.normal(kx, (B, E, H, W), dtype=jnp.float32)

    # Module __init__ sets scaling_matrix = eye(num_endmembers) (trainable).  Perturb it
    # deterministically so the matmul is non-trivial to verify.
    scaling_matrix = jnp.eye(E, dtype=jnp.float32) + 0.01 * jax.random.normal(
        ks, (E, E), dtype=jnp.float32
    )

    out = jax.block_until_ready(abundance_scaling(x, scaling_matrix))
    ref = jnp.einsum("ek,bkhw->behw", scaling_matrix, x)
    assert out.shape == (B, E, H, W)
    assert jnp.allclose(out, ref, atol=1e-5, rtol=1e-4)

    # Odd batch + larger spatial extent exercises the full-extent-row / auto-tiling paths.
    x2 = jax.random.normal(kx, (3, 4, 64, 64), dtype=jnp.float32)
    out2 = jax.block_until_ready(abundance_scaling(x2, scaling_matrix))
    ref2 = jnp.einsum("ek,bkhw->behw", scaling_matrix, x2)
    assert jnp.allclose(out2, ref2, atol=1e-5, rtol=1e-4)

    print("KERNEL_OK")
</pallas_src>

<mosaic_0001>
module attributes {stable_mosaic.version = 11 : i64} {
  func.func @_scale_kernel(%arg0: i32, %arg1: i32, %arg2: memref<8x8xf32, #tpu.memory_space<vmem>>, %arg3: memref<8x256xf32, #tpu.memory_space<vmem>>, %arg4: memref<8x256xf32, #tpu.memory_space<vmem>>) attributes {dimension_semantics = [#tpu.dimension_semantics<parallel>, #tpu.dimension_semantics<parallel>], iteration_bounds = array<i64: 1, 1>, scalar_prefetch = 0 : i64, scratch_operands = 0 : i64, tpu.core_type = #tpu.core_type<tc>, window_params = [{pipeline_mode = #tpu.pipeline_mode<synchronous>, transform_indices = @transform_0, window_bounds = array<i64: 8, 8>}, {transform_indices = @transform_1, window_bounds = array<i64: 8, 256>}, {transform_indices = @transform_2, window_bounds = array<i64: 8, 256>}]} {
    %c0 = arith.constant 0 : index
    %c0_0 = arith.constant 0 : index
    %0 = vector.load %arg3[%c0, %c0_0] : memref<8x256xf32, #tpu.memory_space<vmem>>, vector<8x256xf32>
    %c0_1 = arith.constant 0 : index
    %c0_2 = arith.constant 0 : index
    %1 = vector.load %arg2[%c0_1, %c0_2] : memref<8x8xf32, #tpu.memory_space<vmem>>, vector<8x8xf32>
    %cst = arith.constant dense<0.000000e+00> : vector<8x256xf32>
    %2 = tpu.matmul %1, %0, %cst {dimension_numbers = #tpu.dot_dimension_numbers<[1], [0], [0], [1], [0, 0, 1, 1], [], []>} : vector<8x8xf32>, vector<8x256xf32>, vector<8x256xf32> -> vector<8x256xf32>
    %c0_3 = arith.constant 0 : index
    %c0_4 = arith.constant 0 : index
    %3 = vector.load %arg4[%c0_3, %c0_4] : memref<8x256xf32, #tpu.memory_space<vmem>>, vector<8x256xf32>
    tpu.vector_store %arg4[%c0_3, %c0_4], %2 {strides = array<i32>} : memref<8x256xf32, #tpu.memory_space<vmem>>, vector<8x256xf32>,
    return
  }
  func.func @transform_0(%arg0: i32, %arg1: i32) -> (i32, i32) {
    %c0_i32 = arith.constant 0 : i32
    %c0_i32_0 = arith.constant 0 : i32
    %c0_i32_1 = arith.constant 0 : i32
    return %c0_i32, %c0_i32_0 : i32, i32
  }
  func.func @transform_1(%arg0: i32, %arg1: i32) -> (i32, i32) {
    %c0_i32 = arith.constant 0 : i32
    return %arg0, %arg1 : i32, i32
  }
  func.func @transform_2(%arg0: i32, %arg1: i32) -> (i32, i32) {
    %c0_i32 = arith.constant 0 : i32
    return %arg0, %arg1 : i32, i32
  }
}

</mosaic_0001>

<bundles_post_ra>
// kernel: tpu_custom_call.1
= control target key start
LH: loop header
LB: loop body
LE: loop exit
PB: predicated region body
PF: predicated region fallthrough
CT: control target
= control target key end

     0   :  { %7 = vsyncpa [#allocation3], 0  ;;  %s231_s0 = inlined_call_operand.hbm [shape: f32[8,8], index: 0, kind: input, shape index: {}]   ;;  %s232_s1 = inlined_call_operand.hbm [shape: f32[8,256], index: 1, kind: input, shape index: {}]   ;;  %s233_s2 = inlined_call_operand.hbm [shape: f32[8,256], index: 2, kind: output, shape index: {}]  }
   0x1   :  { %8 = vsyncpa [#allocation6], 0 }
   0x2   :  { %9 = vsyncpa [#allocation4], 0  ;;  %s203_s9 = smov [#allocation2]   ;;  %s204_s11 = smov [#allocation5]  }
   0x3   :  { %s16_s10 = sshll.u32 %s203_s9, 4  ;;  %s26_s12 = sshll.u32 %s204_s11, 4  ;;  %s17_s10 = int_to_ptr.vmem [resolvable:$true] %s16_s10  ;;  %s27_s12 = int_to_ptr.vmem [resolvable:$true] %s26_s12 }
   0x4   :  { %s145_s13 = scalar_lea.vmem %s17_s10, 128  ;;  %p150_p1 = scmp.lt.s32.totalorder %s17_s10, %s17_s10 }
   0x5   :  { %p146_p0 = scmp.ne.s32.totalorder %s17_s10, %s145_s13  ;;  %p151_p2 = scmp.lt.s32.totalorder %s145_s13, %s145_s13 }
   0x7   :  { %p152_p3 = por %p151_p2, %p150_p1 }
   0x9   :  { %p153_p4 = pnand %p152_p3, %p146_p0 }
   0xb   :  { %156 = shalt.err (!%p153_p4)
}
   0xc   :  { %19 = dma.hbm_to_vmem [thread:$0]  %s231_s0, 128, %s17_s10, [#allocation3]  }
   0xd   :  { %s165_s16 = scalar_lea.vmem %s27_s12, 256  ;;  %p170_p6 = scmp.lt.s32.totalorder %s27_s12, %s27_s12 }
   0xe   :  { %p166_p5 = scmp.ne.s32.totalorder %s27_s12, %s165_s16  ;;  %p171_p7 = scmp.lt.s32.totalorder %s165_s16, %s165_s16 }
  0x10   :  { %p172_p8 = por %p171_p7, %p170_p6 }
  0x12   :  { %p173_p9 = pnand %p172_p8, %p166_p5 }
  0x14   :  { %176 = shalt.err (!%p173_p9)
}
  0x15   :  { %29 = dma.hbm_to_vmem [thread:$0]  %s232_s1, 256, %s27_s12, [#allocation6]  }
  0x16   :  { %197 = dma.done.wait [#allocation3], 128  }
  0x17   :  { %198 = vsyncadd [#allocation3], 4294967168 }
  0x18   :  { %199 = dma.done.wait [#allocation6], 256  }
  0x19   :  { %200 = vsyncadd [#allocation6], 4294967040  ;;  %v205_v0 = vmov 0.0   ;;  %v37_v1 = vld [vmem:[#allocation5 + $0x8] sm:$0xff]  ;;  %v36_v2 = vld [vmem:[#allocation5] sm:$0xff]  ;;  %vm39_vm0 = vcmask 64512  }
  0x1a   :  { %107 = vmatprep.mubr.f32.mxu0 %v205_v0  ;;  %v38_v3 = vld [vmem:[#allocation2] sm:$0xff]  ;;  %73 = vmatprep.subr.mxu0 %v37_v1  ;;  %s206_s0 = smov [#allocation7]  }
  0x1b   :  { %74 = vmatpush1.msra.mxu0 %v36_v2  ;;  %s122_s19 = sshll.u32 %s206_s0, 4  ;;  %s123_s19 = int_to_ptr.vmem [resolvable:$true] %s122_s19 }
  0x1c   :  { %132 = vmatmul.mubr.msk.f32.vlgmr.msra.gmra.mxu0 %vm39_vm0, %v38_v3  ;;  %s177_s1 = scalar_lea.vmem %s123_s19, 256  ;;  %p182_p11 = scmp.lt.s32.totalorder %s123_s19, %s123_s19 }
  0x1d   :  { %p178_p10 = scmp.ne.s32.totalorder %s123_s19, %s177_s1  ;;  %p183_p12 = scmp.lt.s32.totalorder %s177_s1, %s177_s1 }
  0x1f   :  { %p184_p13 = por %p183_p12, %p182_p11 }
  0x21   :  { %p185_p0 = pnand %p184_p13, %p178_p10 }
  0xdc   :  { %v109_v4 = vpop.f32.mrf.mxu0 }
  0xdd   :  { %114 = vst [vmem:[#allocation7] sm:$0xff] %v109_v4 }
  0xde   :  { %v111_v5 = vpop.f32.mrf.mxu0 }
  0xdf   :  { %115 = vst [vmem:[#allocation7 + $0x8] sm:$0xff] %v111_v5 }
  0xe0   :  { %188 = shalt.err (!%p185_p0)
}
  0xe1   :  { %125 = dma.vmem_to_hbm [thread:$0]  %s123_s19, 256, %s233_s2, [#allocation4]  }
  0xe2   :  { %201 = dma.done.wait [#allocation4], 256  }
  0xe3   :  { %202 = vsyncadd [#allocation4], 4294967040 }
  0xe4   :  { %129 = vsyncpa [#allocation3], 1 }
  0xe5   :  { %130 = vsyncpa [#allocation6], 1 }
  0xe6   :  { %131 = vsyncpa [#allocation4], 1 }

</bundles_post_ra>
